<compile_context>
chip_gen: v7x
topology: tpu7x:2x2x1
jax: 0.10.0
libtpu: 0.0.40
codegen_flags: <defaults>
</compile_context>

<pallas_src>
import functools

import jax
import jax.numpy as jnp
from jax.experimental import pallas as pl
from jax.experimental.pallas import tpu as pltpu

NCLS = 18          # classifier output size (as in the PyTorch module)
NCLS_PAD = 128     # lane/sublane-dense padded class dim (sliced back outside)
CSTEM = 32         # stand-in stem width (b4's real stem is 48 / pooled 1792)
CSTEM_PAD = 128    # padded stem channel dim
LANE = 128
TILE_P_MAX = 4096  # spatial (im2col column) tile size


def _round_up(x, m):
    return (x + m - 1) // m * m


def _swish(v):
    # explicit sigmoid (exp on the EUP) * v; works in f32 or bf16
    return v * (1.0 / (1.0 + jnp.exp(-v)))


# ---------------------------------------------------------------------------
# Fused kernel.  Per grid step (n, t):
#   stem tile:  hT[c, p] = swish( (stem_w^T @ patches_T)[c, p] + b[c] )
#   pool partial: lane-tile-aligned adds into acc[c, 0:128]
#   finalize (last t): one lane reduce -> pooled column -> fc^T @ pooled
#                      (+ bias, padded-column correction pre-folded) -> sigmoid
# Shapes seen by the kernel:
#   patch_ref: [1, K, TILE_P]            bf16
#   swT_ref  : [CSTEM_PAD, K]            bf16   (stem weights^T, zero-pad rows)
#   sb_ref   : [CSTEM_PAD, 1]            f32    (stem bias column)
#   fwT_ref  : [NCLS_PAD, CSTEM_PAD]     f32    (fc weights^T, 1/P folded in)
#   fbT_ref  : [NCLS_PAD, 1]             f32    (fc bias col, pad-correction folded)
#   o_ref    : [1, NCLS_PAD, 1]          f32
#   acc_ref  : [CSTEM_PAD, 128]          f32    scratch (channel partial sums)
# ---------------------------------------------------------------------------
def fused_stem_head_kernel(patch_ref, swT_ref, sb_ref, fwT_ref, fbT_ref,
                           o_ref, acc_ref, *, tile_p, eltwise_dtype):
    t = pl.program_id(1)

    @pl.when(t == 0)
    def _():
        acc_ref[...] = jnp.zeros_like(acc_ref)

    # conv-stem tile on the MXU (bf16 in, f32 accumulate): [128,K] @ [K,TILE_P]
    h = jnp.dot(swT_ref[...], patch_ref[0],
                preferred_element_type=jnp.float32)          # [128, TILE_P]
    h = h + sb_ref[...]                                      # per-channel bias

    # swish / SiLU (bf16 on v6e/v7x, f32 on v5e); pool accumulation stays f32
    a = _swish(h.astype(eltwise_dtype)).astype(jnp.float32)

    # global-average-pool partial sums: lane-tile-aligned VALU adds only.
    groups = tile_p // LANE
    part = a[:, 0:LANE]
    for g in range(1, groups):
        part = part + a[:, g * LANE:(g + 1) * LANE]
    acc_ref[...] += part

    # finalize: one cross-lane reduce, tiny head matmul, sigmoid, store.
    @pl.when(t == pl.num_programs(1) - 1)
    def _():
        pooled = jnp.sum(acc_ref[...], axis=1, keepdims=True)        # [128, 1]
        logits = jnp.dot(fwT_ref[...], pooled,
                         preferred_element_type=jnp.float32) + fbT_ref[...]
        o_ref[0] = (1.0 / (1.0 + jnp.exp(-logits))).astype(o_ref.dtype)


# ---------------------------------------------------------------------------
# im2col for the 3x3 / stride-2 / pad-1 stem conv, emitted TRANSPOSED as
# [N, K, P]  (K = 9*Cin on the sublane axis, spatial P on the lane axis).
# TODO(synk): replace with in-kernel halo'd NHWC strip assembly to remove this
# wrapper-side HBM round trip.
# ---------------------------------------------------------------------------
def im2col_3x3_s2_kp(x_nhwc):
    N, H, W, C = x_nhwc.shape
    OH, OW = H // 2, W // 2
    xp = jnp.pad(x_nhwc, ((0, 0), (1, 1), (1, 1), (0, 0)))
    cols = []
    for dh in range(3):
        for dw in range(3):
            cols.append(xp[:, dh:dh + 2 * OH:2, dw:dw + 2 * OW:2, :])
    p = jnp.stack(cols, axis=1)                  # [N, 9, OH, OW, C]
    p = jnp.transpose(p, (0, 1, 4, 2, 3))        # [N, 9, C, OH, OW]
    return p.reshape(N, 9 * C, OH * OW), OH, OW  # [N, K, P]


def _eltwise_dtype():
    """bf16 element-wise path on chips with bf16 VPU/EUP (v6e/v7x), f32 otherwise."""
    try:
        kind = jax.devices()[0].device_kind.lower()
    except Exception:
        return jnp.float32
    if any(v in kind for v in ("v2", "v3", "v4", "v5")):
        return jnp.float32
    return jnp.bfloat16


def cnn_model_forward(x_nchw, params):
    """Forward pass.  x_nchw: [N, 3, H, W] float32 -> [N, 18] sigmoid probs."""
    x = jnp.transpose(x_nchw, (0, 2, 3, 1)).astype(jnp.bfloat16)    # NHWC, bf16
    N, H, W, Cin = x.shape

    patches, OH, OW = im2col_3x3_s2_kp(x)        # [N, K, P] bf16
    P = OH * OW
    K = 9 * Cin

    TILE_P = min(TILE_P_MAX, _round_up(P, LANE))
    P_pad = _round_up(P, TILE_P)
    n_pad = P_pad - P
    if n_pad:
        patches = jnp.pad(patches, ((0, 0), (0, 0), (0, n_pad)))
    T = P_pad // TILE_P

    cstem = params["stem_w"].shape[1]
    # lane/sublane-dense padded params; weights transposed so stem channels sit
    # on sublanes and spatial P rides the 128-lane axis.
    swT = jnp.zeros((CSTEM_PAD, K), jnp.bfloat16).at[:cstem, :].set(
        params["stem_w"].T.astype(jnp.bfloat16))
    sb = jnp.zeros((CSTEM_PAD, 1), jnp.float32).at[:cstem, 0].set(
        params["stem_b"][0])
    # fold the average-pool 1/P into the fc weights ...
    fw_scaled = params["fc_w"] / float(P)                       # [cstem, NCLS]
    fwT = jnp.zeros((NCLS_PAD, CSTEM_PAD), jnp.float32).at[:NCLS, :cstem].set(
        fw_scaled.T)
    # ... and fold the padded-column correction into the fc bias: each of the
    # n_pad zero patch columns contributes exactly swish(stem_b) per channel.
    swish_b = params["stem_b"] * jax.nn.sigmoid(params["stem_b"])   # [1, cstem]
    fb_eff = params["fc_b"] - float(n_pad) * (swish_b @ fw_scaled)  # [1, NCLS]
    fbT = jnp.zeros((NCLS_PAD, 1), jnp.float32).at[:NCLS, 0].set(fb_eff[0])

    kernel = functools.partial(fused_stem_head_kernel, tile_p=TILE_P,
                               eltwise_dtype=_eltwise_dtype())

    cost = pl.CostEstimate(
        flops=2 * N * P_pad * K * CSTEM_PAD + 2 * N * CSTEM_PAD * NCLS_PAD,
        transcendentals=N * P_pad * CSTEM_PAD + N * NCLS_PAD,
        bytes_accessed=int(patches.size) * 2 + int(swT.size) * 2
        + (int(sb.size) + int(fwT.size) + int(fbT.size)) * 4
        + N * NCLS_PAD * 4,
    )

    out = pl.pallas_call(
        kernel,
        out_shape=jax.ShapeDtypeStruct((N, NCLS_PAD, 1), jnp.float32),
        grid_spec=pltpu.PrefetchScalarGridSpec(
            num_scalar_prefetch=0,
            grid=(N, T),
            in_specs=[
                # spatial tile of transposed im2col columns (contiguous DMA,
                # P on the lane axis)
                pl.BlockSpec((1, K, TILE_P), lambda n, t: (n, 0, t)),
                # grid-invariant (resident) weights
                pl.BlockSpec((CSTEM_PAD, K), lambda n, t: (0, 0)),
                pl.BlockSpec((CSTEM_PAD, 1), lambda n, t: (0, 0)),
                pl.BlockSpec((NCLS_PAD, CSTEM_PAD), lambda n, t: (0, 0)),
                pl.BlockSpec((NCLS_PAD, 1), lambda n, t: (0, 0)),
            ],
            out_specs=pl.BlockSpec((1, NCLS_PAD, 1), lambda n, t: (n, 0, 0)),
            scratch_shapes=[pltpu.VMEM((CSTEM_PAD, LANE), jnp.float32)],
        ),
        compiler_params=pltpu.CompilerParams(
            dimension_semantics=("parallel", "arbitrary"),
            vmem_limit_bytes=32 * 1024 * 1024),
        cost_estimate=cost,
    )(patches, swT, sb, fwT, fbT)

    return out[:, :NCLS, 0]                       # [N, 18]


# ---------------------------------------------------------------------------
# pure-JAX reference (f32) for a correctness sanity check
# ---------------------------------------------------------------------------
def reference_forward(x_nchw, params):
    x = jnp.transpose(x_nchw, (0, 2, 3, 1)).astype(jnp.float32)
    patches, OH, OW = im2col_3x3_s2_kp(x)               # [N, K, P] f32
    h = jnp.einsum("nkp,kc->npc", patches, params["stem_w"]) + params["stem_b"]
    h = h * jax.nn.sigmoid(h)
    pooled = jnp.mean(h, axis=1)                        # [N, cstem]
    logits = pooled @ params["fc_w"] + params["fc_b"]
    return jax.nn.sigmoid(logits)


def init_params(key, cin=3, cstem=CSTEM, ncls=NCLS):
    k1, k2, k3, k4 = jax.random.split(key, 4)
    return {
        "stem_w": 0.05 * jax.random.normal(k1, (9 * cin, cstem), jnp.float32),
        "stem_b": 0.01 * jax.random.normal(k2, (1, cstem), jnp.float32),
        "fc_w":   0.05 * jax.random.normal(k3, (cstem, ncls), jnp.float32),
        "fc_b":   0.01 * jax.random.normal(k4, (1, ncls), jnp.float32),
    }


if __name__ == "__main__":
    key = jax.random.PRNGKey(0)
    kx, kp = jax.random.split(key)

    # small, forward-consistent shapes: batch=2, RGB channels=3, spatial=16
    x = jax.random.normal(kx, (2, 3, 16, 16), jnp.float32)   # NCHW like PyTorch
    params = init_params(kp)

    out = jax.block_until_ready(cnn_model_forward(x, params))
    assert out.shape == (2, NCLS)
    assert bool(jnp.all((out >= 0.0) & (out <= 1.0)))

    ref = reference_forward(x, params)
    assert bool(jnp.max(jnp.abs(out - ref)) < 1e-2), "mismatch vs JAX reference"
    print("KERNEL_OK")
</pallas_src>

<mosaic_0001>
module attributes {stable_mosaic.version = 11 : i64} {
  func.func @fused_stem_head_kernel(%arg0: i32, %arg1: i32, %arg2: memref<1x27x128xbf16, #tpu.memory_space<vmem>>, %arg3: memref<128x27xbf16, #tpu.memory_space<vmem>>, %arg4: memref<128x1xf32, #tpu.memory_space<vmem>>, %arg5: memref<128x128xf32, #tpu.memory_space<vmem>>, %arg6: memref<128x1xf32, #tpu.memory_space<vmem>>, %arg7: memref<1x128x1xf32, #tpu.memory_space<vmem>>, %arg8: memref<128x128xf32, #tpu.memory_space<vmem>>) attributes {dimension_semantics = [#tpu.dimension_semantics<parallel>, #tpu.dimension_semantics<arbitrary>], iteration_bounds = array<i64: 2, 1>, scalar_prefetch = 0 : i64, scratch_operands = 1 : i64, tpu.core_type = #tpu.core_type<tc>, window_params = [{transform_indices = @transform_0, window_bounds = array<i64: 1, 27, 128>}, {pipeline_mode = #tpu.pipeline_mode<synchronous>, transform_indices = @transform_1, window_bounds = array<i64: 128, 27>}, {pipeline_mode = #tpu.pipeline_mode<synchronous>, transform_indices = @transform_2, window_bounds = array<i64: 128, 1>}, {pipeline_mode = #tpu.pipeline_mode<synchronous>, transform_indices = @transform_3, window_bounds = array<i64: 128, 128>}, {pipeline_mode = #tpu.pipeline_mode<synchronous>, transform_indices = @transform_4, window_bounds = array<i64: 128, 1>}, {transform_indices = @transform_5, window_bounds = array<i64: 1, 128, 1>}]} {
    %c0_i32 = arith.constant 0 : i32
    %0 = arith.cmpi eq, %arg1, %c0_i32 : i32
    %1 = arith.extui %0 : i1 to i32
    %c0_i32_0 = arith.constant 0 : i32
    %2 = arith.cmpi ne, %1, %c0_i32_0 : i32
    scf.if %2 {
      %cst_16 = arith.constant 0.000000e+00 : f32
      %26 = vector.broadcast %cst_16 : f32 to vector<128x128xf32>
      %c0_17 = arith.constant 0 : index
      %c0_18 = arith.constant 0 : index
      %27 = vector.load %arg8[%c0_17, %c0_18] : memref<128x128xf32, #tpu.memory_space<vmem>>, vector<128x128xf32>
      tpu.vector_store %arg8[%c0_17, %c0_18], %26 {strides = array<i32>} : memref<128x128xf32, #tpu.memory_space<vmem>>, vector<128x128xf32>,
    } else {
    }
    %c0 = arith.constant 0 : index
    %c0_1 = arith.constant 0 : index
    %3 = vector.load %arg3[%c0, %c0_1] : memref<128x27xbf16, #tpu.memory_space<vmem>>, vector<128x27xbf16>
    %c0_2 = arith.constant 0 : index
    %c0_3 = arith.constant 0 : index
    %c0_4 = arith.constant 0 : index
    %4 = vector.load %arg2[%c0_2, %c0_3, %c0_4] : memref<1x27x128xbf16, #tpu.memory_space<vmem>>, vector<1x27x128xbf16>
    %5 = vector.shape_cast %4 : vector<1x27x128xbf16> to vector<27x128xbf16>
    %cst = arith.constant dense<0.000000e+00> : vector<128x128xf32>
    %6 = tpu.matmul %3, %5, %cst {dimension_numbers = #tpu.dot_dimension_numbers<[1], [0], [0], [1], [0, 0, 1, 1], [], []>} : vector<128x27xbf16>, vector<27x128xbf16>, vector<128x128xf32> -> vector<128x128xf32>
    %c0_5 = arith.constant 0 : index
    %c0_6 = arith.constant 0 : index
    %7 = vector.load %arg4[%c0_5, %c0_6] : memref<128x1xf32, #tpu.memory_space<vmem>>, vector<128x1xf32>
    %8 = vector.broadcast %7 : vector<128x1xf32> to vector<128x128xf32>
    %9 = arith.addf %6, %8 : vector<128x128xf32>
    %10 = arith.truncf %9 : vector<128x128xf32> to vector<128x128xbf16>
    %cst_7 = arith.constant 0.000000e+00 : bf16
    %11 = vector.broadcast %cst_7 : bf16 to vector<128x128xbf16>
    %12 = arith.subf %11, %10 : vector<128x128xbf16>
    %13 = math.exp %12 : vector<128x128xbf16>
    %cst_8 = arith.constant 1.000000e+00 : bf16
    %14 = vector.broadcast %cst_8 : bf16 to vector<128x128xbf16>
    %15 = arith.addf %14, %13 : vector<128x128xbf16>
    %cst_9 = arith.constant 1.000000e+00 : bf16
    %16 = vector.broadcast %cst_9 : bf16 to vector<128x128xbf16>
    %17 = arith.divf %16, %15 : vector<128x128xbf16>
    %18 = arith.mulf %10, %17 : vector<128x128xbf16>
    %19 = arith.extf %18 : vector<128x128xbf16> to vector<128x128xf32>
    %c0_10 = arith.constant 0 : index
    %c0_11 = arith.constant 0 : index
    %20 = vector.load %arg8[%c0_10, %c0_11] : memref<128x128xf32, #tpu.memory_space<vmem>>, vector<128x128xf32>
    %21 = arith.addf %20, %19 : vector<128x128xf32>
    %c0_12 = arith.constant 0 : index
    %c0_13 = arith.constant 0 : index
    %22 = vector.load %arg8[%c0_12, %c0_13] : memref<128x128xf32, #tpu.memory_space<vmem>>, vector<128x128xf32>
    tpu.vector_store %arg8[%c0_12, %c0_13], %21 {strides = array<i32>} : memref<128x128xf32, #tpu.memory_space<vmem>>, vector<128x128xf32>,
    %c0_i32_14 = arith.constant 0 : i32
    %23 = arith.cmpi eq, %arg1, %c0_i32_14 : i32
    %24 = arith.extui %23 : i1 to i32
    %c0_i32_15 = arith.constant 0 : i32
    %25 = arith.cmpi ne, %24, %c0_i32_15 : i32
    scf.if %25 {
      %c0_16 = arith.constant 0 : index
      %c0_17 = arith.constant 0 : index
      %26 = vector.load %arg8[%c0_16, %c0_17] : memref<128x128xf32, #tpu.memory_space<vmem>>, vector<128x128xf32>
      %cst_18 = arith.constant dense<0.000000e+00> : vector<128xf32>
      %27 = vector.multi_reduction <add>, %26, %cst_18 [1] : vector<128x128xf32> to vector<128xf32>
      %28 = vector.shape_cast %27 : vector<128xf32> to vector<128x1xf32>
      %c0_19 = arith.constant 0 : index
      %c0_20 = arith.constant 0 : index
      %29 = vector.load %arg5[%c0_19, %c0_20] : memref<128x128xf32, #tpu.memory_space<vmem>>, vector<128x128xf32>
      %cst_21 = arith.constant dense<0.000000e+00> : vector<128x1xf32>
      %30 = tpu.matmul %29, %28, %cst_21 {dimension_numbers = #tpu.dot_dimension_numbers<[1], [0], [0], [1], [0, 0, 1, 1], [], []>} : vector<128x128xf32>, vector<128x1xf32>, vector<128x1xf32> -> vector<128x1xf32>
      %c0_22 = arith.constant 0 : index
      %c0_23 = arith.constant 0 : index
      %31 = vector.load %arg6[%c0_22, %c0_23] : memref<128x1xf32, #tpu.memory_space<vmem>>, vector<128x1xf32>
      %32 = arith.addf %30, %31 : vector<128x1xf32>
      %cst_24 = arith.constant 0.000000e+00 : f32
      %33 = vector.broadcast %cst_24 : f32 to vector<128x1xf32>
      %34 = arith.subf %33, %32 : vector<128x1xf32>
      %35 = math.exp %34 : vector<128x1xf32>
      %cst_25 = arith.constant 1.000000e+00 : f32
      %36 = vector.broadcast %cst_25 : f32 to vector<128x1xf32>
      %37 = arith.addf %36, %35 : vector<128x1xf32>
      %cst_26 = arith.constant 1.000000e+00 : f32
      %38 = vector.broadcast %cst_26 : f32 to vector<128x1xf32>
      %39 = arith.divf %38, %37 : vector<128x1xf32>
      %c0_27 = arith.constant 0 : index
      %c0_28 = arith.constant 0 : index
      %c0_29 = arith.constant 0 : index
      %40 = vector.load %arg7[%c0_27, %c0_28, %c0_29] : memref<1x128x1xf32, #tpu.memory_space<vmem>>, vector<1x128x1xf32>
      %41 = vector.shape_cast %40 : vector<1x128x1xf32> to vector<128x1xf32>
      %42 = vector.shape_cast %39 : vector<128x1xf32> to vector<1x128x1xf32>
      tpu.vector_store %arg7[%c0_27, %c0_28, %c0_29], %42 {strides = array<i32>} : memref<1x128x1xf32, #tpu.memory_space<vmem>>, vector<1x128x1xf32>,
    } else {
    }
    return
  }
  func.func @transform_0(%arg0: i32, %arg1: i32) -> (i32, i32, i32) {
    %c0_i32 = arith.constant 0 : i32
    %c0_i32_0 = arith.constant 0 : i32
    return %arg0, %c0_i32, %arg1 : i32, i32, i32
  }
  func.func @transform_1(%arg0: i32, %arg1: i32) -> (i32, i32) {
    %c0_i32 = arith.constant 0 : i32
    %c0_i32_0 = arith.constant 0 : i32
    %c0_i32_1 = arith.constant 0 : i32
    return %c0_i32, %c0_i32_0 : i32, i32
  }
  func.func @transform_2(%arg0: i32, %arg1: i32) -> (i32, i32) {
    %c0_i32 = arith.constant 0 : i32
    %c0_i32_0 = arith.constant 0 : i32
    %c0_i32_1 = arith.constant 0 : i32
    return %c0_i32, %c0_i32_0 : i32, i32
  }
  func.func @transform_3(%arg0: i32, %arg1: i32) -> (i32, i32) {
    %c0_i32 = arith.constant 0 : i32
    %c0_i32_0 = arith.constant 0 : i32
    %c0_i32_1 = arith.constant 0 : i32
    return %c0_i32, %c0_i32_0 : i32, i32
  }
  func.func @transform_4(%arg0: i32, %arg1: i32) -> (i32, i32) {
    %c0_i32 = arith.constant 0 : i32
    %c0_i32_0 = arith.constant 0 : i32
    %c0_i32_1 = arith.constant 0 : i32
    return %c0_i32, %c0_i32_0 : i32, i32
  }
  func.func @transform_5(%arg0: i32, %arg1: i32) -> (i32, i32, i32) {
    %c0_i32 = arith.constant 0 : i32
    %c0_i32_0 = arith.constant 0 : i32
    %c0_i32_1 = arith.constant 0 : i32
    return %arg0, %c0_i32, %c0_i32_0 : i32, i32, i32
  }
}

</mosaic_0001>

<bundles_post_ra>
// kernel: tpu_custom_call.1
= control target key start
LH: loop header
LB: loop body
LE: loop exit
PB: predicated region body
PF: predicated region fallthrough
CT: control target
= control target key end

     0   :  { %s1499_s18 = smov 0   ;;  %s1501_s19 = smov 0   ;;  %s1778_s0 = inlined_call_operand.vmem [shape: bf16[2,27,128], index: 0, kind: input, shape index: {}]   ;;  %s1779_s1 = inlined_call_operand.vmem [shape: bf16[128,27], index: 1, kind: input, shape index: {}]   ;;  %s1780_s2 = inlined_call_operand.vmem [shape: f32[128,1], index: 2, kind: input, shape index: {}]   ;;  %s1781_s3 = inlined_call_operand.vmem [shape: f32[128,128], index: 3, kind: input, shape index: {}]   ;;  %s1782_s4 = inlined_call_operand.vmem [shape: f32[128,1], index: 4, kind: input, shape index: {}]   ;;  %s1783_s5 = inlined_call_operand.vmem [shape: f32[2,128,1], index: 5, kind: output, shape index: {}]  }
   0x1   :  { %s1503_s20 = smov 0  }
   0x2 LB: > { %s27_s21 = sadd.s32 1, %s1461_s19  ;;  %p1116_p0 = scmp.ge.s32.totalorder %s1465_s20, 1  ;;  %s1465_s20 = sphi %s1503_s20, %s15_s20   ;;  %s1461_s19 = sphi %s1501_s19, %s1785_s19   ;;  %s1457_s18 = sphi %s1499_s18, %s1784_s18  }
   0x3   : > { %p29_p1 = scmp.ge.s32.totalorder %s27_s21, 2  ;;  %p204_p2 = scmp.lt.s32.totalorder %s1465_s20, 3 }
   0x5   : > { %s1787_s21 = smov (%p29_p1, %s27_s21), 0  ;;  %p205_p3 = pnand %p1116_p0, %p204_p2 }
   0x6   : > { %p235_p4 = scmp.lt.s32.totalorder (!%p205_p3), %s1457_s18, 1  ;;  %vm462_vm0 = vcmask (!%p205_p3), 1044480   ;;  %v1339_v0 = vld [vmem:[%s1779_s1] sm:$0xff] (!%p205_p3)   ;;  %vm437_vm1 = vcmask (!%p205_p3), 220160   ;;  %vm463_vm2 = vcmask (!%p205_p3), 1045504   ;;  %v1467_v1 = vmov (!%p205_p3), 65535  }
   0x7   : > { %208 = sbr.rel (%p205_p3) target bundleno = 732 (0x2dc), region = 40  ;;  %v464_v2 = vsel (!%p205_p3), %vm462_vm0, 4294967295, %v1467_v1  ;;  %1189 = vmatprep.mubr.msk.bf16.mxu0 (!%p205_p3), %vm437_vm1, %v1339_v0  ;;  %v1468_v3 = vmov (!%p205_p3), 0   ;;  %v290_v8 = vld [vmem:[%s1780_s2] sm:$0xff] (!%p205_p3)  ;;  %v292_v9 = vld [vmem:[%s1780_s2 + $0x10] sm:$0xff] (!%p205_p3)  ;;  %v1340_v10 = vld [vmem:[%s1779_s1 + $0x8] sm:$0xff] (!%p205_p3)  }
   0x8   : > { %1335 = vset.pattern.permute.xlu0 (!%p205_p3), %v1468_v3  ;;  %1336 = vset.pattern.permute.xlu1 (!%p205_p3), %v1468_v3  ;;  %v465_v5 = vsel (!%p205_p3), %vm463_vm2, %v464_v2, 0  ;;  %v1341_v11 = vld [vmem:[%s1779_s1 + $0x10] sm:$0xff] (!%p205_p3)   ;;  %v291_v12 = vld [vmem:[%s1780_s2 + $0x8] sm:$0xff] (!%p205_p3)  ;;  %v293_v13 = vld [vmem:[%s1780_s2 + $0x18] sm:$0xff] (!%p205_p3)  ;;  %vm1026_vm3 = vcmask (!%p205_p3), 7168  }
   0x9   : > { %308 = vperm.xlu0 (!%p205_p3), %1335, %v290_v8   ;;  %318 = vperm.xlu1 (!%p205_p3), %1336, %v292_v9   ;;  %v294_v14 = vld [vmem:[%s1780_s2 + $0x20] sm:$0xff] (!%p205_p3)  ;;  %v295_v15 = vld [vmem:[%s1780_s2 + $0x28] sm:$0xff] (!%p205_p3)  ;;  %v1342_v16 = vld [vmem:[%s1779_s1 + $0x18] sm:$0xff] (!%p205_p3)  }
   0xa   : > { %v1343_v17 = vld [vmem:[%s1779_s1 + $0x20] sm:$0xff] (!%p205_p3)   ;;  %v296_v18 = vld [vmem:[%s1780_s2 + $0x30] sm:$0xff] (!%p205_p3)  ;;  %v297_v19 = vld [vmem:[%s1780_s2 + $0x38] sm:$0xff] (!%p205_p3) }
   0xb   : > { %v298_v20 = vld [vmem:[%s1780_s2 + $0x40] sm:$0xff] (!%p205_p3)  ;;  %v299_v21 = vld [vmem:[%s1780_s2 + $0x48] sm:$0xff] (!%p205_p3)  ;;  %v1345_v23 = vld [vmem:[%s1779_s1 + $0x30] sm:$0xff] (!%p205_p3)  }
   0xc   : > { %v1344_v22 = vld [vmem:[%s1779_s1 + $0x28] sm:$0xff] (!%p205_p3)   ;;  %v300_v24 = vld [vmem:[%s1780_s2 + $0x50] sm:$0xff] (!%p205_p3)  ;;  %v301_v25 = vld [vmem:[%s1780_s2 + $0x58] sm:$0xff] (!%p205_p3) }
   0xd   : > { %313 = vperm.xlu0 (!%p205_p3), %1335, %v291_v12   ;;  %323 = vperm.xlu1 (!%p205_p3), %1336, %v293_v13   ;;  %v302_v26 = vld [vmem:[%s1780_s2 + $0x60] sm:$0xff] (!%p205_p3)  ;;  %v303_v27 = vld [vmem:[%s1780_s2 + $0x68] sm:$0xff] (!%p205_p3)  ;;  %v1346_v28 = vld [vmem:[%s1779_s1 + $0x38] sm:$0xff] (!%p205_p3)  }
   0xe   : > { %s1789_s18 = smov (!%p235_p4, %s1457_s18), 1  ;;  %v304_v29 = vld [vmem:[%s1780_s2 + $0x70] sm:$0xff]  ;;  %v305_v30 = vld [vmem:[%s1780_s2 + $0x78] sm:$0xff] }
   0xf   : > { %s1141_s24 = sshll.u32 %s1789_s18, 4  ;;  %s1142_s8 = sshll.u32 %s1789_s18, 7 }
  0x10   : > { %s242_s27 = scalar_lea.vmem %s1778_s0, %s1141_s24  ;;  %s1735_s11 = scalar_lea.vmem %s1783_s5, %s1142_s8 }
  0x11   : > { %v1337_v4 = vld [vmem:[%s242_s27] sm:$0xff]   ;;  %v1338_v6 = vld [vmem:[%s242_s27 + $0x8] sm:$0x3f]   ;;  %328 = vperm.xlu0 %1335, %v294_v14   ;;  %333 = vperm.xlu1 %1336, %v295_v15  }
  0x12   : > { %1185 = vmatprep.subr.bf16.mxu0 %v1337_v4  ;;  %v467_v7 = vand.u32 %v1338_v6, %v465_v5 }
  0x13   : > { %1186 = vmatpush3.bf16.msra.mxu0 %v1337_v4 }
  0x14   : > { %1187 = vmatprep.subr.bf16.mxu0 %v467_v7 }
  0x15   : > { %338 = vperm.xlu0 %1335, %v296_v18   ;;  %343 = vperm.xlu1 %1336, %v297_v19  }
  0x17   : > { %1188 = vmatpush3.bf16.msra.mxu0 %v467_v7 }
  0x19   : > { %348 = vperm.xlu0 %1335, %v298_v20   ;;  %353 = vperm.xlu1 %1336, %v299_v21  }
  0x1a   : > { %1190 = vmatmul.mubr.msk.bf16.vlgmr.msra.gmra.mrb[0].mxu0 %vm437_vm1, %v1340_v10 }
  0x1b   : > { %1193 = vmatprep.mubr.msk.bf16.mxu0 %vm437_vm1, %v1341_v11 }
  0x1d   : > { %358 = vperm.xlu0 %1335, %v300_v24   ;;  %363 = vperm.xlu1 %1336, %v301_v25  }
  0x21   : > { %368 = vperm.xlu0 %1335, %v302_v26   ;;  %373 = vperm.xlu1 %1336, %v303_v27  }
  0x22   : > { %1194 = vmatmul.mubr.msk.bf16.gmra.mrb[4].mxu0 %vm437_vm1, %v1342_v16 }
  0x23   : > { %1197 = vmatprep.mubr.msk.bf16.mxu0 %vm437_vm1, %v1343_v17 }
  0x25   : > { %378 = vperm.xlu0 %1335, %v304_v29   ;;  %383 = vperm.xlu1 %1336, %v305_v30  }
  0x2a   : > { %1198 = vmatmul.mubr.msk.bf16.gmra.mrb[8].mxu0 %vm437_vm1, %v1344_v22 }
  0x2b   : > { %1201 = vmatprep.mubr.msk.bf16.mxu0 %vm437_vm1, %v1345_v23 }
  0x32   : > { %1202 = vmatmul.mubr.msk.bf16.gmra.mrb[12].mxu0 %vm437_vm1, %v1346_v28 }
  0x88   : > { %v309_v31 = vpop.permute.xlu0 %308  ;;  %v319_v32 = vpop.permute.xlu1 %318 }
  0x8c   : > { %v314_v33 = vpop.permute.xlu0 %313  ;;  %v324_v34 = vpop.permute.xlu1 %323 }
  0x90   : > { %v329_v35 = vpop.permute.xlu0 %328  ;;  %v334_v36 = vpop.permute.xlu1 %333 }
  0x94   : > { %v339_v38 = vpop.permute.xlu0 %338  ;;  %v344_v40 = vpop.permute.xlu1 %343 }
  0x98   : > { %v349_v49 = vpop.permute.xlu0 %348  ;;  %v354_v51 = vpop.permute.xlu1 %353 }
  0x9c   : > { %v359_v63 = vpop.permute.xlu0 %358  ;;  %v364_v1 = vpop.permute.xlu1 %363 }
  0xa0   : > { %v369_v10 = vpop.permute.xlu0 %368  ;;  %v374_v14 = vpop.permute.xlu1 %373 }
  0xa4   : > { %v379_v26 = vpop.permute.xlu0 %378  ;;  %v384_v29 = vpop.permute.xlu1 %383 }
  0xed   : > { %v1191_v37 = vpop.f32.mrb[0].mxu0 }
  0xee   : > { %v503_v39 = vpop.f32.mrb[1].mxu0  ;;  %v512_v42 = vadd.f32 %v1191_v37, %v319_v32 }
  0xef   : > { %v1192_v41 = vpop.f32.mrb[2].mxu0  ;;  %v504_v45 = vadd.f32 %v503_v39, %v309_v31 }
  0xf0   : > { %v515_v43 = vadd.f32 %v1192_v41, %v324_v34  ;;  %v506_v44 = vpop.f32.mrb[3].mxu0 }
  0xf1   : > { %v507_v46 = vadd.f32 %v506_v44, %v314_v33 }
  0xf2   : > { %v1603_v47 = vpack.c.bf16 %v515_v43, %v512_v42 }
  0xf3   : > { %v1605_v48 = vpack.c.bf16 %v507_v46, %v504_v45 }
  0xf4   : > { %v575_v50 = vsub.bf16 0, %v1603_v47 }
  0xf5   : > { %v574_v52 = vsub.bf16 0, %v1605_v48  ;;  %v1195_v53 = vpop.f32.mrb[4].mxu0 }
  0xf6   : > { %v586_v54 = vmul.bf16 1069105081, %v575_v50  ;;  %v519_v55 = vpop.f32.mrb[5].mxu0  ;;  %v528_v58 = vadd.f32 %v1195_v53, %v339_v38 }
  0xf7   : > { %v583_v56 = vmul.bf16 1069105081, %v574_v52  ;;  %v1196_v57 = vpop.f32.mrb[6].mxu0  ;;  %v520_v61 = vadd.f32 %v519_v55, %v329_v35 }
  0xf8   : > { %1347 = vpow.bf16 %v586_v54  ;;  %v531_v59 = vadd.f32 %v1196_v57, %v344_v40  ;;  %v522_v60 = vpop.f32.mrb[7].mxu0 }
  0xf9   : > { %1349 = vpow.bf16 %v583_v56  ;;  %v523_v62 = vadd.f32 %v522_v60, %v334_v36 }
  0xfa   : > { %v1609_v0 = vpack.c.bf16 %v531_v59, %v528_v58 }
  0xfb   : > { %v1611_v2 = vpack.c.bf16 %v523_v62, %v520_v61 }
  0xfc   : > { %v577_v3 = vsub.bf16 0, %v1609_v0 }
  0xfd   : > { %v576_v4 = vsub.bf16 0, %v1611_v2  ;;  %v1199_v5 = vpop.f32.mrb[8].mxu0 }
  0xfe   : > { %v592_v6 = vmul.bf16 1069105081, %v577_v3  ;;  %v535_v7 = vpop.f32.mrb[9].mxu0  ;;  %v544_v11 = vadd.f32 %v1199_v5, %v359_v63 }
  0xff   : > { %v589_v8 = vmul.bf16 1069105081, %v576_v4  ;;  %v1200_v9 = vpop.f32.mrb[10].mxu0  ;;  %v536_v15 = vadd.f32 %v535_v7, %v349_v49 }
 0x100   : > { %1351 = vpow.bf16 %v592_v6  ;;  %v547_v12 = vadd.f32 %v1200_v9, %v364_v1  ;;  %v538_v13 = vpop.f32.mrb[11].mxu0 }
 0x101   : > { %1353 = vpow.bf16 %v589_v8  ;;  %v539_v16 = vadd.f32 %v538_v13, %v354_v51 }
 0x102   : > { %v1615_v17 = vpack.c.bf16 %v547_v12, %v544_v11 }
 0x103   : > { %v1348_v18 = vpop.eup %1347  ;;  %v1617_v19 = vpack.c.bf16 %v539_v16, %v536_v15 }
 0x104   : > { %v1350_v20 = vpop.eup %1349  ;;  %v607_v21 = vadd.bf16 1065369472, %v1348_v18  ;;  %v579_v22 = vsub.bf16 0, %v1615_v17 }
 0x105   : > { %v606_v23 = vadd.bf16 1065369472, %v1350_v20  ;;  %v578_v24 = vsub.bf16 0, %v1617_v19  ;;  %v1203_v25 = vpop.f32.mrb[12].mxu0 }
 0x106   : > { %v598_v27 = vmul.bf16 1069105081, %v579_v22  ;;  %v551_v28 = vpop.f32.mrb[13].mxu0  ;;  %1355 = vrcp.bf16 %v607_v21  ;;  %v560_v32 = vadd.f32 %v1203_v25, %v379_v26 }
 0x107   : > { %v595_v30 = vmul.bf16 1069105081, %v578_v24  ;;  %v1204_v31 = vpop.f32.mrb[14].mxu0  ;;  %1357 = vrcp.bf16 %v606_v23  ;;  %v552_v35 = vadd.f32 %v551_v28, %v369_v10 }
 0x108   : > { %1359 = vpow.bf16 %v598_v27  ;;  %v563_v33 = vadd.f32 %v1204_v31, %v384_v29  ;;  %v554_v34 = vpop.f32.mrb[15].mxu0  ;;  %v759_v31 = vld [vmem:[%s1781_s3 + $0x30] sm:$0xff] }
 0x109   : > { %1361 = vpow.bf16 %v595_v30  ;;  %v555_v36 = vadd.f32 %v554_v34, %v374_v14  ;;  %1246 = vmatprep.mubr.f32.mxu1 %v759_v31 }
 0x10a   : > { %v1621_v37 = vpack.c.bf16 %v563_v33, %v560_v32  ;;  %v753_v32 = vld [vmem:[%s1781_s3] sm:$0xff] }
 0x10b   : > { %v1352_v38 = vpop.eup %1351  ;;  %v1623_v39 = vpack.c.bf16 %v555_v36, %v552_v35  ;;  %1237 = vmatprep.mubr.f32.mxu0 %v753_v32 }
 0x10c   : > { %v1354_v40 = vpop.eup %1353  ;;  %v609_v41 = vadd.bf16 1065369472, %v1352_v38  ;;  %v581_v42 = vsub.bf16 0, %v1621_v37 }
 0x10d   : > { %v608_v43 = vadd.bf16 1065369472, %v1354_v40  ;;  %v580_v44 = vsub.bf16 0, %v1623_v39 }
 0x10e   : > { %v604_v45 = vmul.bf16 1069105081, %v581_v42  ;;  %1363 = vrcp.bf16 %v609_v41 }
 0x10f   : > { %v601_v46 = vmul.bf16 1069105081, %v580_v44  ;;  %1365 = vrcp.bf16 %v608_v43 }
 0x110   : > { %1367 = vpow.bf16 %v604_v45 }
 0x111   : > { %v1356_v49 = vpop.eup %1355  ;;  %1369 = vpow.bf16 %v601_v46 }
 0x112   : > { %v1358_v50 = vpop.eup %1357  ;;  %v617_v53 = vmul.bf16 1065369472, %v1356_v49 }
 0x113   : > { %v1360_v51 = vpop.eup %1359  ;;  %v615_v52 = vmul.bf16 1065369472, %v1358_v50 }
 0x114   : > { %v1362_v54 = vpop.eup %1361  ;;  %v611_v55 = vadd.bf16 1065369472, %v1360_v51  ;;  %v631_v60 = vmul.bf16 %v617_v53, %v1603_v47 }
 0x115   : > { %v610_v56 = vadd.bf16 1065369472, %v1362_v54  ;;  %v630_v57 = vmul.bf16 %v615_v52, %v1605_v48 }
 0x116   : > { %1371 = vrcp.bf16 %v611_v55  ;;  %v640_v1 = vunpack.c.l.bf16 %v631_v60  ;;  %v641_v9 = vunpack.c.h.bf16 %v631_v60  ;;  %v754_v60 = vld [vmem:[%s1781_s3 + $0x8] sm:$0xff] }
 0x117   : > { %v639_v58 = vunpack.c.h.bf16 %v630_v57  ;;  %v638_v59 = vunpack.c.l.bf16 %v630_v57  ;;  %1373 = vrcp.bf16 %v610_v56 }
 0x119   : > { %v1364_v61 = vpop.eup %1363  ;;  %723 = vadd.xlane.f32.xlu1 %v639_v58  ;;  %721 = vadd.xlane.f32.xlu0 %v638_v59  ;;  %v760_v59 = vld [vmem:[%s1781_s3 + $0x38] sm:$0xff] }
 0x11a   : > { %v1366_v62 = vpop.eup %1365  ;;  %v621_v4 = vmul.bf16 1065369472, %v1364_v61  ;;  %v761_v61 = vld [vmem:[%s1781_s3 + $0x40] sm:$0xff] }
 0x11b   : > { %v1368_v63 = vpop.eup %1367  ;;  %v619_v3 = vmul.bf16 1065369472, %v1366_v62  ;;  %v755_v62 = vld [vmem:[%s1781_s3 + $0x10] sm:$0xff] }
 0x11c   : > { %v1370_v5 = vpop.eup %1369  ;;  %v613_v6 = vadd.bf16 1065369472, %v1368_v63  ;;  %v633_v47 = vmul.bf16 %v621_v4, %v1609_v0  ;;  %v762_v63 = vld [vmem:[%s1781_s3 + $0x48] sm:$0xff]  ;;  %v757_v4 = vld [vmem:[%s1781_s3 + $0x20] sm:$0xff] }
 0x11d   : > { %v612_v7 = vadd.bf16 1065369472, %v1370_v5  ;;  %725 = vadd.xlane.f32.xlu0 %v640_v1  ;;  %v632_v48 = vmul.bf16 %v619_v3, %v1611_v2  ;;  %v756_v1 = vld [vmem:[%s1781_s3 + $0x18] sm:$0xff]  ;;  %v763_v3 = vld [vmem:[%s1781_s3 + $0x50] sm:$0xff] }
 0x11e   : > { %1375 = vrcp.bf16 %v613_v6  ;;  %v644_v12 = vunpack.c.l.bf16 %v633_v47  ;;  %v645_v2 = vunpack.c.h.bf16 %v633_v47  ;;  %v764_v5 = vld [vmem:[%s1781_s3 + $0x58] sm:$0xff]  ;;  %v758_v6 = vld [vmem:[%s1781_s3 + $0x28] sm:$0xff] }
 0x11f   : > { %v642_v8 = vunpack.c.l.bf16 %v632_v48  ;;  %1377 = vrcp.bf16 %v612_v7  ;;  %v643_v13 = vunpack.c.h.bf16 %v632_v48  ;;  %v765_v7 = vld [vmem:[%s1781_s3 + $0x60] sm:$0xff]  ;;  %v766_v48 = vld [vmem:[%s1781_s3 + $0x68] sm:$0xff]  ;;  %v776_v47 = vld [vmem:[%s1782_s4 + $0x38] sm:$0xff] }
 0x121   : > { %v1372_v10 = vpop.eup %1371  ;;  %729 = vadd.xlane.f32.xlu1 %v642_v8  ;;  %727 = vadd.xlane.f32.xlu0 %v641_v9  ;;  %v767_v8 = vld [vmem:[%s1781_s3 + $0x70] sm:$0xff]  ;;  %v768_v9 = vld [vmem:[%s1781_s3 + $0x78] sm:$0xff] }
 0x122   : > { %v1374_v11 = vpop.eup %1373  ;;  %v625_v15 = vmul.bf16 1065369472, %v1372_v10  ;;  %v770_v10 = vld [vmem:[%s1782_s4 + $0x8] sm:$0xff] }
 0x123   : > { %v623_v14 = vmul.bf16 1065369472, %v1374_v11  ;;  %v775_v11 = vld [vmem:[%s1782_s4 + $0x30] sm:$0xff] }
 0x124   : > { %v635_v20 = vmul.bf16 %v625_v15, %v1615_v17 }
 0x125   : > { %733 = vadd.xlane.f32.xlu1 %v644_v12  ;;  %731 = vadd.xlane.f32.xlu0 %v643_v13  ;;  %v634_v16 = vmul.bf16 %v623_v14, %v1617_v19  ;;  %v769_v12 = vld [vmem:[%s1782_s4] sm:$0xff] }
 0x126   : > { %v648_v22 = vunpack.c.l.bf16 %v635_v20  ;;  %v649_v28 = vunpack.c.h.bf16 %v635_v20 }
 0x127   : > { %v646_v18 = vunpack.c.l.bf16 %v634_v16  ;;  %v647_v23 = vunpack.c.h.bf16 %v634_v16 }
 0x129   : > { %v1376_v21 = vpop.eup %1375  ;;  %737 = vadd.xlane.f32.xlu1 %v646_v18  ;;  %735 = vadd.xlane.f32.xlu0 %v645_v2 }
 0x12a   : > { %v1378_v0 = vpop.eup %1377  ;;  %v629_v25 = vmul.bf16 1065369472, %v1376_v21  ;;  %v778_v21 = vld [vmem:[%s1782_s4 + $0x48] sm:$0xff] }
 0x12b   : > { %v627_v24 = vmul.bf16 1065369472, %v1378_v0 }
 0x12c   : > { %v637_v19 = vmul.bf16 %v629_v25, %v1621_v37 }
 0x12d   : > { %741 = vadd.xlane.f32.xlu1 %v648_v22  ;;  %739 = vadd.xlane.f32.xlu0 %v647_v23  ;;  %v636_v26 = vmul.bf16 %v627_v24, %v1623_v39  ;;  %v772_v22 = vld [vmem:[%s1782_s4 + $0x18] sm:$0xff]  ;;  %v777_v24 = vld [vmem:[%s1782_s4 + $0x40] sm:$0xff] }
 0x12e   : > { %v652_v29 = vunpack.c.l.bf16 %v637_v19  ;;  %v653_v30 = vunpack.c.h.bf16 %v637_v19 }
 0x12f   : > { %v650_v27 = vunpack.c.l.bf16 %v636_v26  ;;  %v651_v17 = vunpack.c.h.bf16 %v636_v26  ;;  %v771_v26 = vld [vmem:[%s1782_s4 + $0x10] sm:$0xff] }
 0x131   : > { %745 = vadd.xlane.f32.xlu1 %v650_v27  ;;  %743 = vadd.xlane.f32.xlu0 %v649_v28 }
 0x135   : > { %749 = vadd.xlane.f32.xlu1 %v652_v29  ;;  %747 = vadd.xlane.f32.xlu0 %v651_v17 }
 0x139   : > { %751 = vadd.xlane.f32.xlu0 %v653_v30 }
 0x1a6   : > { %v724_v33 = vpop.xlane.xlu1 %723  ;;  %v722_v34 = vpop.xlane.xlu0 %721 }
 0x1a7   : > { %v1261_v35 = vpack.c.bf16 %v724_v33, %v722_v34 }
 0x1a9   : > { %1262 = vmatprep.subr.bf16.mxu0 %v1261_v35  ;;  %1293 = vmatprep.subr.bf16.mxu1 %v1261_v35 }
 0x1aa   : > { %1264 = vmatpush3.bf16.msra.mxu0 %v1261_v35  ;;  %1301 = vmatpush3.bf16.msra.mxu1 %v1261_v35  ;;  %v726_v36 = vpop.xlane.xlu0 %725 }
 0x1ae   : > { %v730_v37 = vpop.xlane.xlu1 %729  ;;  %v728_v38 = vpop.xlane.xlu0 %727 }
 0x1af   : > { %v1265_v39 = vpack.c.bf16 %v728_v38, %v726_v36  ;;  %v780_v38 = vld [vmem:[%s1782_s4 + $0x58] sm:$0xff] }
 0x1b1   : > { %1266 = vmatprep.subr.bf16.mxu0 %v1265_v39  ;;  %1294 = vmatprep.subr.bf16.mxu1 %v1265_v39 }
 0x1b2   : > { %v734_v40 = vpop.xlane.xlu1 %733  ;;  %1268 = vmatpush3.bf16.msra.mxu0 %v1265_v39  ;;  %1302 = vmatpush3.bf16.msra.mxu1 %v1265_v39  ;;  %v732_v41 = vpop.xlane.xlu0 %731 }
 0x1b3   : > { %v1269_v42 = vpack.c.bf16 %v732_v41, %v730_v37  ;;  %v779_v41 = vld [vmem:[%s1782_s4 + $0x50] sm:$0xff] }
 0x1b5   : > { %1270 = vmatprep.subr.bf16.mxu0 %v1269_v42  ;;  %1295 = vmatprep.subr.bf16.mxu1 %v1269_v42 }
 0x1b6   : > { %v738_v43 = vpop.xlane.xlu1 %737  ;;  %1272 = vmatpush3.bf16.msra.mxu0 %v1269_v42  ;;  %1303 = vmatpush3.bf16.msra.mxu1 %v1269_v42  ;;  %v736_v44 = vpop.xlane.xlu0 %735 }
 0x1b7   : > { %v1273_v45 = vpack.c.bf16 %v736_v44, %v734_v40 }
 0x1b9   : > { %1274 = vmatprep.subr.bf16.mxu0 %v1273_v45  ;;  %1296 = vmatprep.subr.bf16.mxu1 %v1273_v45 }
 0x1ba   : > { %v742_v46 = vpop.xlane.xlu1 %741  ;;  %1276 = vmatpush3.bf16.msra.mxu0 %v1273_v45  ;;  %1304 = vmatpush3.bf16.msra.mxu1 %v1273_v45  ;;  %v740_v49 = vpop.xlane.xlu0 %739 }
 0x1bb   : > { %v1277_v50 = vpack.c.bf16 %v740_v49, %v738_v43 }
 0x1bd   : > { %1278 = vmatprep.subr.bf16.mxu0 %v1277_v50  ;;  %1297 = vmatprep.subr.bf16.mxu1 %v1277_v50 }
 0x1be   : > { %1280 = vmatpush3.bf16.msra.mxu0 %v1277_v50  ;;  %1305 = vmatpush3.bf16.msra.mxu1 %v1277_v50  ;;  %v744_v51 = vpop.xlane.xlu0 %743  ;;  %v746_v53 = vpop.xlane.xlu1 %745  ;;  %v773_v50 = vld [vmem:[%s1782_s4 + $0x20] sm:$0xff] }
 0x1bf   : > { %v1281_v52 = vpack.c.bf16 %v744_v51, %v742_v46  ;;  %v774_v46 = vld [vmem:[%s1782_s4 + $0x28] sm:$0xff] }
 0x1c1   : > { %1282 = vmatprep.subr.bf16.mxu0 %v1281_v52  ;;  %1298 = vmatprep.subr.bf16.mxu1 %v1281_v52 }
 0x1c2   : > { %1284 = vmatpush3.bf16.msra.mxu0 %v1281_v52  ;;  %1306 = vmatpush3.bf16.msra.mxu1 %v1281_v52  ;;  %v748_v54 = vpop.xlane.xlu0 %747  ;;  %v750_v56 = vpop.xlane.xlu1 %749 }
 0x1c3   : > { %v1285_v55 = vpack.c.bf16 %v748_v54, %v746_v53 }
 0x1c5   : > { %1286 = vmatprep.subr.bf16.mxu0 %v1285_v55  ;;  %1299 = vmatprep.subr.bf16.mxu1 %v1285_v55 }
 0x1c6   : > { %1288 = vmatpush3.bf16.msra.mxu0 %v1285_v55  ;;  %1307 = vmatpush3.bf16.msra.mxu1 %v1285_v55  ;;  %v752_v57 = vpop.xlane.xlu0 %751 }
 0x1c7   : > { %v1289_v58 = vpack.c.bf16 %v752_v57, %v750_v56 }
 0x1c9   : > { %1290 = vmatprep.subr.bf16.mxu0 %v1289_v58  ;;  %1300 = vmatprep.subr.bf16.mxu1 %v1289_v58 }
 0x1ca   : > { %1292 = vmatpush3.bf16.msra.mxu0 %v1289_v58  ;;  %1308 = vmatpush3.bf16.msra.mxu1 %v1289_v58 }
 0x1cd   : > { %1247 = vmatmul.mubr.f32.vlgmr.msra.gmra.mrb[0].mxu1 %v760_v59  ;;  %1238 = vmatmul.mubr.f32.vlgmr.msra.gmra.mrb[16].mxu0 %v754_v60  ;;  %v782_v59 = vld [vmem:[%s1782_s4 + $0x68] sm:$0xff] }
 0x1ce   : > { %1249 = vmatprep.mubr.f32.mxu1 %v761_v61  ;;  %1240 = vmatprep.mubr.f32.mxu0 %v755_v62 }
 0x1d1   : > { %1250 = vmatmul.mubr.f32.gmra.mrb[2].mxu1 %v762_v63  ;;  %1241 = vmatmul.mubr.f32.gmra.mrb[18].mxu0 %v756_v1 }
 0x1d2   : > { %1252 = vmatprep.mubr.f32.mxu1 %v763_v3  ;;  %1243 = vmatprep.mubr.f32.mxu0 %v757_v4 }
 0x1d5   : > { %1253 = vmatmul.mubr.f32.gmra.mrb[4].mxu1 %v764_v5  ;;  %1244 = vmatmul.mubr.f32.gmra.mrb[20].mxu0 %v758_v6 }
 0x1d6   : > { %1255 = vmatprep.mubr.f32.mxu1 %v765_v7 }
 0x1d9   : > { %1256 = vmatmul.mubr.f32.gmra.mrb[6].mxu1 %v766_v48 }
 0x1da   : > { %1258 = vmatprep.mubr.f32.mxu1 %v767_v8 }
 0x1dd   : > { %1259 = vmatmul.mubr.f32.gmra.mrb[8].mxu1 %v768_v9  ;;  %v781_v9 = vld [vmem:[%s1782_s4 + $0x60] sm:$0xff] }
 0x2a0   : > { %v1248_v13 = vpop.f32.mrb[0].mxu1  ;;  %v1239_v14 = vpop.f32.mrb[16].mxu0 }
 0x2a1   : > { %v887_v15 = vadd.f32 %v1248_v13, %v776_v47  ;;  %v881_v16 = vpop.f32.mrb[1].mxu1  ;;  %v857_v18 = vadd.f32 %v1239_v14, %v770_v10  ;;  %v851_v2 = vpop.f32.mrb[17].mxu0 }
 0x2a2   : > { %v882_v20 = vadd.f32 %v881_v16, %v775_v11  ;;  %v852_v0 = vadd.f32 %v851_v2, %v769_v12 }
 0x2a3   : > { %v937_v23 = vsub.f32 0.0, %v887_v15  ;;  %v931_v25 = vsub.f32 0.0, %v857_v18 }
 0x2a4   : > { %v936_v27 = vsub.f32 0.0, %v882_v20  ;;  %v1251_v28 = vpop.f32.mrb[2].mxu1  ;;  %v930_v19 = vsub.f32 0.0, %v852_v0  ;;  %v1242_v29 = vpop.f32.mrb[18].mxu0 }
 0x2a5   : > { %v960_v17 = vmul.f32 1.442695, %v937_v23  ;;  %v897_v30 = vadd.f32 %v1251_v28, %v778_v21  ;;  %v891_v31 = vpop.f32.mrb[3].mxu1  ;;  %v948_v32 = vmul.f32 1.442695, %v931_v25  ;;  %v867_v33 = vadd.f32 %v1242_v29, %v772_v22  ;;  %v861_v34 = vpop.f32.mrb[19].mxu0 }
 0x2a6   : > { %v958_v35 = vmul.f32 1.442695, %v936_v27  ;;  %v892_v36 = vadd.f32 %v891_v31, %v777_v24  ;;  %v946_v37 = vmul.f32 1.442695, %v930_v19  ;;  %v862_v39 = vadd.f32 %v861_v34, %v771_v26  ;;  %v784_v21 = vld [vmem:[%s1782_s4 + $0x78] sm:$0xff]  ;;  %v783_v23 = vld [vmem:[%s1782_s4 + $0x70] sm:$0xff] }
 0x2a7   : > { %1379 = vpow2.f32 %v960_v17  ;;  %v939_v40 = vsub.f32 0.0, %v897_v30  ;;  %v933_v42 = vsub.f32 0.0, %v867_v33 }
 0x2a8   : > { %1381 = vpow2.f32 %v958_v35  ;;  %v938_v43 = vsub.f32 0.0, %v892_v36  ;;  %v1254_v44 = vpop.f32.mrb[4].mxu1  ;;  %v932_v45 = vsub.f32 0.0, %v862_v39  ;;  %v1245_v49 = vpop.f32.mrb[20].mxu0 }
 0x2a9   : > { %v964_v51 = vmul.f32 1.442695, %v939_v40  ;;  %1383 = vpow2.f32 %v948_v32  ;;  %v907_v52 = vadd.f32 %v1254_v44, %v780_v38  ;;  %v901_v53 = vpop.f32.mrb[5].mxu1  ;;  %v952_v54 = vmul.f32 1.442695, %v933_v42  ;;  %v871_v55 = vpop.f32.mrb[21].mxu0 }
 0x2aa   : > { %v962_v56 = vmul.f32 1.442695, %v938_v43  ;;  %1385 = vpow2.f32 %v946_v37  ;;  %v902_v57 = vadd.f32 %v901_v53, %v779_v41  ;;  %v950_v58 = vmul.f32 1.442695, %v932_v45 }
 0x2ab   : > { %1387 = vpow2.f32 %v964_v51  ;;  %v941_v60 = vsub.f32 0.0, %v907_v52  ;;  %v877_v61 = vadd.f32 %v1245_v49, %v774_v46  ;;  %v872_v62 = vadd.f32 %v871_v55, %v773_v50 }
 0x2ac   : > { %1389 = vpow2.f32 %v962_v56  ;;  %v940_v63 = vsub.f32 0.0, %v902_v57  ;;  %v1257_v1 = vpop.f32.mrb[6].mxu1 }
 0x2ad   : > { %v968_v3 = vmul.f32 1.442695, %v941_v60  ;;  %1391 = vpow2.f32 %v952_v54  ;;  %v917_v4 = vadd.f32 %v1257_v1, %v782_v59  ;;  %v911_v5 = vpop.f32.mrb[7].mxu1  ;;  %v935_v6 = vsub.f32 0.0, %v877_v61 }
 0x2ae   : > { %v966_v7 = vmul.f32 1.442695, %v940_v63  ;;  %1393 = vpow2.f32 %v950_v58  ;;  %v934_v48 = vsub.f32 0.0, %v872_v62  ;;  %v912_v18 = vadd.f32 %v911_v5, %v781_v9 }
 0x2af   : > { %1395 = vpow2.f32 %v968_v3  ;;  %v943_v8 = vsub.f32 0.0, %v917_v4  ;;  %v956_v47 = vmul.f32 1.442695, %v935_v6 }
 0x2b0   : > { %1397 = vpow2.f32 %v966_v7  ;;  %v954_v10 = vmul.f32 1.442695, %v934_v48  ;;  %v1260_v11 = vpop.f32.mrb[8].mxu1  ;;  %v942_v28 = vsub.f32 0.0, %v912_v18 }
 0x2b1   : > { %v1380_v12 = vpop.eup %1379  ;;  %v972_v13 = vmul.f32 1.442695, %v943_v8  ;;  %1399 = vpow2.f32 %v956_v47  ;;  %v921_v14 = vpop.f32.mrb[9].mxu1  ;;  %v927_v19 = vadd.f32 %v1260_v11, %v784_v21 }
 0x2b2   : > { %v1382_v15 = vpop.eup %1381  ;;  %v985_v16 = vadd.f32 1.0, %v1380_v12  ;;  %1401 = vpow2.f32 %v954_v10  ;;  %v922_v30 = vadd.f32 %v921_v14, %v783_v23  ;;  %v970_v37 = vmul.f32 1.442695, %v942_v28 }
 0x2b3   : > { %v1384_v2 = vpop.eup %1383  ;;  %v984_v20 = vadd.f32 1.0, %v1382_v15  ;;  %1403 = vpow2.f32 %v972_v13  ;;  %v945_v38 = vsub.f32 0.0, %v927_v19 }
 0x2b4   : > { %v1386_v0 = vpop.eup %1385  ;;  %1405 = vrcp.f32 %v985_v16  ;;  %v979_v22 = vadd.f32 1.0, %v1384_v2  ;;  %v944_v41 = vsub.f32 0.0, %v922_v30 }
 0x2b5   : > { %v1388_v24 = vpop.eup %1387  ;;  %1407 = vrcp.f32 %v984_v20  ;;  %v978_v25 = vadd.f32 1.0, %v1386_v0  ;;  %v976_v50 = vmul.f32 1.442695, %v945_v38 }
 0x2b6   : > { %v1390_v26 = vpop.eup %1389  ;;  %v987_v27 = vadd.f32 1.0, %v1388_v24  ;;  %1409 = vrcp.f32 %v979_v22  ;;  %v974_v52 = vmul.f32 1.442695, %v944_v41 }
 0x2b7   : > { %v1392_v29 = vpop.eup %1391  ;;  %v986_v17 = vadd.f32 1.0, %v1390_v26  ;;  %1411 = vrcp.f32 %v978_v25 }
 0x2b8   : > { %v1394_v31 = vpop.eup %1393  ;;  %1413 = vrcp.f32 %v987_v27  ;;  %v981_v32 = vadd.f32 1.0, %v1392_v29 }
 0x2b9   : > { %v1396_v33 = vpop.eup %1395  ;;  %1415 = vrcp.f32 %v986_v17  ;;  %v980_v34 = vadd.f32 1.0, %v1394_v31 }
 0x2ba   : > { %v1398_v35 = vpop.eup %1397  ;;  %v989_v36 = vadd.f32 1.0, %v1396_v33  ;;  %1417 = vrcp.f32 %v981_v32 }
 0x2bb   : > { %v1400_v39 = vpop.eup %1399  ;;  %v988_v40 = vadd.f32 1.0, %v1398_v35  ;;  %1419 = vrcp.f32 %v980_v34 }
 0x2bc   : > { %v1402_v42 = vpop.eup %1401  ;;  %1421 = vrcp.f32 %v989_v36  ;;  %v983_v43 = vadd.f32 1.0, %v1400_v39 }
 0x2bd   : > { %v1404_v44 = vpop.eup %1403  ;;  %1423 = vrcp.f32 %v988_v40  ;;  %v982_v45 = vadd.f32 1.0, %v1402_v42 }
 0x2be   : > { %v1406_v46 = vpop.eup %1405  ;;  %v991_v49 = vadd.f32 1.0, %v1404_v44  ;;  %1425 = vpow2.f32 %v970_v37 }
 0x2bf   : > { %v1408_v51 = vpop.eup %1407  ;;  %1034 = vst.msk [vmem:[%s1735_s11 + $0x38] sm:$0xff] %vm1026_vm3, %v1406_v46  ;;  %1427 = vrcp.f32 %v983_v43 }
 0x2c0   : > { %v1410_v53 = vpop.eup %1409  ;;  %1033 = vst.msk [vmem:[%s1735_s11 + $0x30] sm:$0xff] %vm1026_vm3, %v1408_v51  ;;  %1429 = vrcp.f32 %v991_v49 }
 0x2c1   : > { %v1412_v54 = vpop.eup %1411  ;;  %1028 = vst.msk [vmem:[%s1735_s11 + $0x8] sm:$0xff] %vm1026_vm3, %v1410_v53  ;;  %1431 = vrcp.f32 %v982_v45 }
 0x2c2   : > { %v1414_v55 = vpop.eup %1413  ;;  %1027 = vst.msk [vmem:[%s1735_s11] sm:$0xff] %vm1026_vm3, %v1412_v54  ;;  %1433 = vpow2.f32 %v976_v50 }
 0x2c3   : > { %v1416_v56 = vpop.eup %1415  ;;  %1036 = vst.msk [vmem:[%s1735_s11 + $0x48] sm:$0xff] %vm1026_vm3, %v1414_v55  ;;  %1435 = vpow2.f32 %v974_v52 }
 0x2c4   : > { %v1418_v57 = vpop.eup %1417  ;;  %1035 = vst.msk [vmem:[%s1735_s11 + $0x40] sm:$0xff] %vm1026_vm3, %v1416_v56 }
 0x2c5   : > { %v1420_v58 = vpop.eup %1419  ;;  %1030 = vst.msk [vmem:[%s1735_s11 + $0x18] sm:$0xff] %vm1026_vm3, %v1418_v57 }
 0x2c6   : > { %v1422_v59 = vpop.eup %1421  ;;  %1029 = vst.msk [vmem:[%s1735_s11 + $0x10] sm:$0xff] %vm1026_vm3, %v1420_v58 }
 0x2c7   : > { %v1424_v60 = vpop.eup %1423  ;;  %1038 = vst.msk [vmem:[%s1735_s11 + $0x58] sm:$0xff] %vm1026_vm3, %v1422_v59 }
 0x2c8   : > { %v1426_v61 = vpop.eup %1425  ;;  %1037 = vst.msk [vmem:[%s1735_s11 + $0x50] sm:$0xff] %vm1026_vm3, %v1424_v60 }
 0x2c9   : > { %v1428_v62 = vpop.eup %1427  ;;  %v990_v63 = vadd.f32 1.0, %v1426_v61 }
 0x2ca   : > { %v1430_v1 = vpop.eup %1429  ;;  %1032 = vst.msk [vmem:[%s1735_s11 + $0x28] sm:$0xff] %vm1026_vm3, %v1428_v62 }
 0x2cb   : > { %v1432_v3 = vpop.eup %1431  ;;  %1040 = vst.msk [vmem:[%s1735_s11 + $0x68] sm:$0xff] %vm1026_vm3, %v1430_v1  ;;  %1437 = vrcp.f32 %v990_v63 }
 0x2cc   : > { %v1434_v4 = vpop.eup %1433  ;;  %1031 = vst.msk [vmem:[%s1735_s11 + $0x20] sm:$0xff] %vm1026_vm3, %v1432_v3 }
 0x2cd   : > { %v1436_v5 = vpop.eup %1435  ;;  %v993_v6 = vadd.f32 1.0, %v1434_v4 }
 0x2ce   : > { %v992_v7 = vadd.f32 1.0, %v1436_v5 }
 0x2cf   : > { %1439 = vrcp.f32 %v993_v6 }
 0x2d0   : > { %1441 = vrcp.f32 %v992_v7 }
 0x2d5   : > { %v1438_v48 = vpop.eup %1437 }
 0x2d6   : > { %1039 = vst.msk [vmem:[%s1735_s11 + $0x60] sm:$0xff] %vm1026_vm3, %v1438_v48 }
 0x2d9   : > { %v1440_v8 = vpop.eup %1439 }
 0x2da   : > { %v1442_v9 = vpop.eup %1441  ;;  %1042 = vst.msk [vmem:[%s1735_s11 + $0x78] sm:$0xff] %vm1026_vm3, %v1440_v8 }
 0x2db   : > { %1041 = vst.msk [vmem:[%s1735_s11 + $0x70] sm:$0xff] %vm1026_vm3, %v1442_v9 }
 0x2dc PF: > { %s15_s20 = sadd.s32 1, %s1465_s20   ;;  %s1784_s18 = smov %s1461_s19 }
 0x2dd   : > { %p12_p5 = scmp.ge.s32.totalorder %s15_s20, 4   ;;  %s1785_s19 = smov %s1787_s21 }
 0x2df   :  { %14 = sbr.rel (!%p12_p5) target bundleno = 2 (0x2), region = 78 }

</bundles_post_ra>
